<compile_context>
chip_gen: v6e
topology: v6e:2x2x1
jax: 0.10.0
libtpu: 0.0.40
codegen_flags: <defaults>
</compile_context>

<pallas_src>
import functools

import jax
import jax.numpy as jnp
from jax.experimental import pallas as pl


def lstm_fused_kernel(x_ref, h0_ref, wx_ref, wh_ref, b_ref, mem_ref,
                      h_seq_ref, c_ref, *, T, B, L):
    """Entire T-step LSTM recurrence in one kernel invocation.

    Everything is VMEM-resident (no grid); h/c live in vregs across the
    statically-unrolled time loop; the x-projection + bias is hoisted out of
    the serial path as one bulk MXU matmul.
    """
    # ---- Hoisted input projection (one MXU pass over all T*B rows) --------
    # zx[t*B:(t+1)*B, :] == x_t @ Wx + b   (bias folded in once, f32 accum).
    zx = jnp.dot(x_ref[...].astype(wx_ref.dtype), wx_ref[...],
                 preferred_element_type=jnp.float32) + b_ref[...]   # (T*B, 4L) f32

    wh = wh_ref[...]                                   # (L, 4L) bf16, loaded once

    # ---- Recurrent state carried in registers ------------------------------
    h = h0_ref[...]                                    # (B, L) f32
    c = jnp.broadcast_to(mem_ref[...], (B, L))         # (1,L)->(B,L), hoisted (once)

    # ---- Serial recurrence: statically unrolled, T is small ----------------
    for t in range(T):
        z = zx[t * B:(t + 1) * B, :] + jnp.dot(
            h.astype(wh.dtype), wh, preferred_element_type=jnp.float32)  # (B, 4L) f32

        # Packed gate order [forget | input | output | update]:
        # one sigmoid over the full vreg (covers f, i, o), one tanh over last L.
        s = jax.nn.sigmoid(z)
        u = jnp.tanh(z[:, 3 * L:])
        ft = s[:, 0 * L:1 * L]
        it = s[:, 1 * L:2 * L]
        ot = s[:, 2 * L:3 * L]

        c = ft * c + it * u                 # Ct
        h = ot * jnp.tanh(c)                # one_step() return value
        h_seq_ref[t] = h                    # per-step store into resident output

    c_ref[...] = c                          # written exactly once after the loop


def _pack_gates(w_full, b):
    """Reorder stacked gate columns [forget|input|update|output] ->
    [forget|input|output|update] so the three sigmoid gates are contiguous."""
    L = w_full.shape[1] // 4
    w_p = jnp.concatenate(
        [w_full[:, 0 * L:2 * L], w_full[:, 3 * L:4 * L], w_full[:, 2 * L:3 * L]],
        axis=1)
    b_p = jnp.concatenate(
        [b[:, 0 * L:2 * L], b[:, 3 * L:4 * L], b[:, 2 * L:3 * L]], axis=1)
    return w_p, b_p


def lstm_forward(x_seq, h0, w_full, b, memory, *, mxu_dtype=jnp.bfloat16):
    """Run T LSTM steps in ONE fused pallas_call (no grid, everything resident).

    Returns (h_seq, c_final): h_seq[t] is what the PyTorch forward() returns at
    step t; c_final is the module's updated self.memory after the last step.
    """
    T, B, dim_in = x_seq.shape
    L = h0.shape[1]

    w_p, b_p = _pack_gates(w_full, b)
    wx = w_p[:dim_in, :].astype(mxu_dtype)   # (dim_in, 4L) bf16, DMA'd once
    wh = w_p[dim_in:, :].astype(mxu_dtype)   # (L, 4L)      bf16, DMA'd once

    x2d = x_seq.reshape(T * B, dim_in)       # flat rows for the bulk x-projection

    kernel = functools.partial(lstm_fused_kernel, T=T, B=B, L=L)

    # Total residency is tiny (<100 KB even with double buffers), so default
    # VMEM limits are fine on v5e/v6e/v7x; no grid -> single input DMA set and
    # single lane-contiguous writeback of the (T, B, L) output slab.
    h_seq, c_final = pl.pallas_call(
        kernel,
        out_shape=(jax.ShapeDtypeStruct((T, B, L), jnp.float32),
                   jax.ShapeDtypeStruct((B, L), jnp.float32)),
    )(x2d, h0, wx, wh, b_p, memory)
    return h_seq, c_final


def lstm_reference(x_seq, h0, w_full, b, memory, *, mxu_dtype=jnp.float32):
    """Pure-JAX scan mirroring the PyTorch one_step loop (module gate order)."""
    L = h0.shape[1]
    w = w_full.astype(mxu_dtype)

    def step(carry, x):
        h, c = carry
        xh = jnp.concatenate([x, h], axis=1)
        z = jnp.dot(xh.astype(mxu_dtype), w,
                    preferred_element_type=jnp.float32) + b
        ft = jax.nn.sigmoid(z[:, 0 * L:1 * L])
        it = jax.nn.sigmoid(z[:, 1 * L:2 * L])
        ut = jnp.tanh(z[:, 2 * L:3 * L])
        ot = jax.nn.sigmoid(z[:, 3 * L:4 * L])
        c_new = ft * c + it * ut
        h_new = ot * jnp.tanh(c_new)
        return (h_new, c_new), h_new

    c0 = jnp.broadcast_to(memory, h0.shape)
    (_, c_T), h_seq = jax.lax.scan(step, (h0, c0), x_seq)
    return h_seq, c_T


if __name__ == "__main__":
    B, DIM_IN, DIM_LATENT, T = 8, 16, 32, 8

    key = jax.random.PRNGKey(0)
    k_w, k_b, k_m, k_x, k_h = jax.random.split(key, 5)

    K = DIM_IN + DIM_LATENT
    bound = 1.0 / jnp.sqrt(jnp.float32(K))
    # Stacked [forget | input | update | output] == the module's 4 nn.Linear
    # layers, pre-transposed so that cat(x, h) @ w_full + b gives the pre-acts.
    w_full = jax.random.uniform(k_w, (K, 4 * DIM_LATENT), jnp.float32, -bound, bound)
    b = jax.random.uniform(k_b, (1, 4 * DIM_LATENT), jnp.float32, -bound, bound)
    memory = jax.random.uniform(k_m, (1, DIM_LATENT), jnp.float32)  # self.memory ~ U(0,1)

    x_seq = jax.random.normal(k_x, (T, B, DIM_IN), jnp.float32)
    h0 = jax.random.normal(k_h, (B, DIM_LATENT), jnp.float32)

    # Fused T-step recurrence in one pallas_call.
    h_seq, c_final = lstm_forward(x_seq, h0, w_full, b, memory)
    jax.block_until_ready((h_seq, c_final))

    # Matched-precision reference (bf16 MXU operands, f32 accumulation & gates).
    # Small extra slack vs. before: the kernel splits the cat(x,h) matmul into
    # x@Wx + h@Wh (f32 re-association only).
    h_ref, c_ref_out = lstm_reference(x_seq, h0, w_full, b, memory,
                                      mxu_dtype=jnp.bfloat16)
    assert jnp.allclose(h_seq, h_ref, atol=1e-3, rtol=1e-3), "h mismatch vs bf16 reference"
    assert jnp.allclose(c_final, c_ref_out, atol=1e-3, rtol=1e-3), "c mismatch vs bf16 reference"

    # Full-f32 reference: semantic sanity check (difference is bf16 MXU rounding only).
    h_f32, c_f32 = lstm_reference(x_seq, h0, w_full, b, memory, mxu_dtype=jnp.float32)
    assert jnp.allclose(h_seq, h_f32, atol=5e-2, rtol=5e-2), "h mismatch vs f32 reference"
    assert jnp.allclose(c_final, c_f32, atol=5e-2, rtol=5e-2), "c mismatch vs f32 reference"

    # T == 1 reproduces exactly the module's forward()/one_step().
    h1, c1 = lstm_forward(x_seq[:1], h0, w_full, b, memory)
    jax.block_until_ready((h1, c1))
    assert jnp.allclose(h1[0], h_ref[0], atol=1e-3, rtol=1e-3)

    print("KERNEL_OK")
</pallas_src>

<mosaic_0001>
module attributes {stable_mosaic.version = 11 : i64} {
  func.func @lstm_fused_kernel(%arg0: memref<64x16xf32, #tpu.memory_space<vmem>>, %arg1: memref<8x32xf32, #tpu.memory_space<vmem>>, %arg2: memref<16x128xbf16, #tpu.memory_space<vmem>>, %arg3: memref<32x128xbf16, #tpu.memory_space<vmem>>, %arg4: memref<1x128xf32, #tpu.memory_space<vmem>>, %arg5: memref<1x32xf32, #tpu.memory_space<vmem>>, %arg6: memref<8x8x32xf32, #tpu.memory_space<vmem>>, %arg7: memref<8x32xf32, #tpu.memory_space<vmem>>) attributes {dimension_semantics = [], scalar_prefetch = 0 : i64, scratch_operands = 0 : i64, tpu.core_type = #tpu.core_type<tc>} {
    %c0 = arith.constant 0 : index
    %c0_0 = arith.constant 0 : index
    %0 = vector.load %arg0[%c0, %c0_0] : memref<64x16xf32, #tpu.memory_space<vmem>>, vector<64x16xf32>
    %1 = arith.truncf %0 : vector<64x16xf32> to vector<64x16xbf16>
    %c0_1 = arith.constant 0 : index
    %c0_2 = arith.constant 0 : index
    %2 = vector.load %arg2[%c0_1, %c0_2] : memref<16x128xbf16, #tpu.memory_space<vmem>>, vector<16x128xbf16>
    %cst = arith.constant dense<0.000000e+00> : vector<64x128xf32>
    %3 = tpu.matmul %1, %2, %cst {dimension_numbers = #tpu.dot_dimension_numbers<[1], [0], [0], [1], [0, 0, 1, 1], [], []>} : vector<64x16xbf16>, vector<16x128xbf16>, vector<64x128xf32> -> vector<64x128xf32>
    %c0_3 = arith.constant 0 : index
    %c0_4 = arith.constant 0 : index
    %4 = vector.load %arg4[%c0_3, %c0_4] : memref<1x128xf32, #tpu.memory_space<vmem>>, vector<1x128xf32>
    %5 = vector.broadcast %4 : vector<1x128xf32> to vector<64x128xf32>
    %6 = arith.addf %3, %5 : vector<64x128xf32>
    %c0_5 = arith.constant 0 : index
    %c0_6 = arith.constant 0 : index
    %7 = vector.load %arg3[%c0_5, %c0_6] : memref<32x128xbf16, #tpu.memory_space<vmem>>, vector<32x128xbf16>
    %c0_7 = arith.constant 0 : index
    %c0_8 = arith.constant 0 : index
    %8 = vector.load %arg1[%c0_7, %c0_8] : memref<8x32xf32, #tpu.memory_space<vmem>>, vector<8x32xf32>
    %c0_9 = arith.constant 0 : index
    %c0_10 = arith.constant 0 : index
    %9 = vector.load %arg5[%c0_9, %c0_10] : memref<1x32xf32, #tpu.memory_space<vmem>>, vector<1x32xf32>
    %10 = vector.shape_cast %9 : vector<1x32xf32> to vector<1x32xf32>
    %11 = vector.broadcast %10 : vector<1x32xf32> to vector<8x32xf32>
    %12 = vector.extract_strided_slice %6 {offsets = [0, 0], sizes = [8, 128], strides = [1, 1]} : vector<64x128xf32> to vector<8x128xf32>
    %13 = arith.truncf %8 : vector<8x32xf32> to vector<8x32xbf16>
    %cst_11 = arith.constant dense<0.000000e+00> : vector<8x128xf32>
    %14 = tpu.matmul %13, %7, %cst_11 {dimension_numbers = #tpu.dot_dimension_numbers<[1], [0], [0], [1], [0, 0, 1, 1], [], []>} : vector<8x32xbf16>, vector<32x128xbf16>, vector<8x128xf32> -> vector<8x128xf32>
    %15 = arith.addf %12, %14 : vector<8x128xf32>
    %16 = arith.negf %15 : vector<8x128xf32>
    %17 = math.exp %16 : vector<8x128xf32>
    %cst_12 = arith.constant 1.000000e+00 : f32
    %18 = vector.broadcast %cst_12 : f32 to vector<8x128xf32>
    %19 = arith.addf %18, %17 : vector<8x128xf32>
    %20 = arith.divf %18, %19 : vector<8x128xf32>
    %21 = vector.extract_strided_slice %15 {offsets = [0, 96], sizes = [8, 32], strides = [1, 1]} : vector<8x128xf32> to vector<8x32xf32>
    %22 = math.tanh %21 : vector<8x32xf32>
    %23 = vector.extract_strided_slice %20 {offsets = [0, 0], sizes = [8, 32], strides = [1, 1]} : vector<8x128xf32> to vector<8x32xf32>
    %24 = vector.extract_strided_slice %20 {offsets = [0, 32], sizes = [8, 32], strides = [1, 1]} : vector<8x128xf32> to vector<8x32xf32>
    %25 = vector.extract_strided_slice %20 {offsets = [0, 64], sizes = [8, 32], strides = [1, 1]} : vector<8x128xf32> to vector<8x32xf32>
    %26 = arith.mulf %23, %11 : vector<8x32xf32>
    %27 = arith.mulf %24, %22 : vector<8x32xf32>
    %28 = arith.addf %26, %27 : vector<8x32xf32>
    %29 = math.tanh %28 : vector<8x32xf32>
    %30 = arith.mulf %25, %29 : vector<8x32xf32>
    %c0_13 = arith.constant 0 : index
    %c0_14 = arith.constant 0 : index
    %c0_15 = arith.constant 0 : index
    %31 = vector.load %arg6[%c0_13, %c0_14, %c0_15] : memref<8x8x32xf32, #tpu.memory_space<vmem>>, vector<1x8x32xf32>
    %32 = vector.shape_cast %31 : vector<1x8x32xf32> to vector<8x32xf32>
    %33 = vector.shape_cast %30 : vector<8x32xf32> to vector<1x8x32xf32>
    tpu.vector_store %arg6[%c0_13, %c0_14, %c0_15], %33 {strides = array<i32>} : memref<8x8x32xf32, #tpu.memory_space<vmem>>, vector<1x8x32xf32>,
    %34 = vector.extract_strided_slice %6 {offsets = [8, 0], sizes = [8, 128], strides = [1, 1]} : vector<64x128xf32> to vector<8x128xf32>
    %35 = arith.truncf %30 : vector<8x32xf32> to vector<8x32xbf16>
    %cst_16 = arith.constant dense<0.000000e+00> : vector<8x128xf32>
    %36 = tpu.matmul %35, %7, %cst_16 {dimension_numbers = #tpu.dot_dimension_numbers<[1], [0], [0], [1], [0, 0, 1, 1], [], []>} : vector<8x32xbf16>, vector<32x128xbf16>, vector<8x128xf32> -> vector<8x128xf32>
    %37 = arith.addf %34, %36 : vector<8x128xf32>
    %38 = arith.negf %37 : vector<8x128xf32>
    %39 = math.exp %38 : vector<8x128xf32>
    %cst_17 = arith.constant 1.000000e+00 : f32
    %40 = vector.broadcast %cst_17 : f32 to vector<8x128xf32>
    %41 = arith.addf %40, %39 : vector<8x128xf32>
    %42 = arith.divf %40, %41 : vector<8x128xf32>
    %43 = vector.extract_strided_slice %37 {offsets = [0, 96], sizes = [8, 32], strides = [1, 1]} : vector<8x128xf32> to vector<8x32xf32>
    %44 = math.tanh %43 : vector<8x32xf32>
    %45 = vector.extract_strided_slice %42 {offsets = [0, 0], sizes = [8, 32], strides = [1, 1]} : vector<8x128xf32> to vector<8x32xf32>
    %46 = vector.extract_strided_slice %42 {offsets = [0, 32], sizes = [8, 32], strides = [1, 1]} : vector<8x128xf32> to vector<8x32xf32>
    %47 = vector.extract_strided_slice %42 {offsets = [0, 64], sizes = [8, 32], strides = [1, 1]} : vector<8x128xf32> to vector<8x32xf32>
    %48 = arith.mulf %45, %28 : vector<8x32xf32>
    %49 = arith.mulf %46, %44 : vector<8x32xf32>
    %50 = arith.addf %48, %49 : vector<8x32xf32>
    %51 = math.tanh %50 : vector<8x32xf32>
    %52 = arith.mulf %47, %51 : vector<8x32xf32>
    %c1 = arith.constant 1 : index
    %c0_18 = arith.constant 0 : index
    %c0_19 = arith.constant 0 : index
    %53 = vector.load %arg6[%c1, %c0_18, %c0_19] : memref<8x8x32xf32, #tpu.memory_space<vmem>>, vector<1x8x32xf32>
    %54 = vector.shape_cast %53 : vector<1x8x32xf32> to vector<8x32xf32>
    %55 = vector.shape_cast %52 : vector<8x32xf32> to vector<1x8x32xf32>
    tpu.vector_store %arg6[%c1, %c0_18, %c0_19], %55 {strides = array<i32>} : memref<8x8x32xf32, #tpu.memory_space<vmem>>, vector<1x8x32xf32>,
    %56 = vector.extract_strided_slice %6 {offsets = [16, 0], sizes = [8, 128], strides = [1, 1]} : vector<64x128xf32> to vector<8x128xf32>
    %57 = arith.truncf %52 : vector<8x32xf32> to vector<8x32xbf16>
    %cst_20 = arith.constant dense<0.000000e+00> : vector<8x128xf32>
    %58 = tpu.matmul %57, %7, %cst_20 {dimension_numbers = #tpu.dot_dimension_numbers<[1], [0], [0], [1], [0, 0, 1, 1], [], []>} : vector<8x32xbf16>, vector<32x128xbf16>, vector<8x128xf32> -> vector<8x128xf32>
    %59 = arith.addf %56, %58 : vector<8x128xf32>
    %60 = arith.negf %59 : vector<8x128xf32>
    %61 = math.exp %60 : vector<8x128xf32>
    %cst_21 = arith.constant 1.000000e+00 : f32
    %62 = vector.broadcast %cst_21 : f32 to vector<8x128xf32>
    %63 = arith.addf %62, %61 : vector<8x128xf32>
    %64 = arith.divf %62, %63 : vector<8x128xf32>
    %65 = vector.extract_strided_slice %59 {offsets = [0, 96], sizes = [8, 32], strides = [1, 1]} : vector<8x128xf32> to vector<8x32xf32>
    %66 = math.tanh %65 : vector<8x32xf32>
    %67 = vector.extract_strided_slice %64 {offsets = [0, 0], sizes = [8, 32], strides = [1, 1]} : vector<8x128xf32> to vector<8x32xf32>
    %68 = vector.extract_strided_slice %64 {offsets = [0, 32], sizes = [8, 32], strides = [1, 1]} : vector<8x128xf32> to vector<8x32xf32>
    %69 = vector.extract_strided_slice %64 {offsets = [0, 64], sizes = [8, 32], strides = [1, 1]} : vector<8x128xf32> to vector<8x32xf32>
    %70 = arith.mulf %67, %50 : vector<8x32xf32>
    %71 = arith.mulf %68, %66 : vector<8x32xf32>
    %72 = arith.addf %70, %71 : vector<8x32xf32>
    %73 = math.tanh %72 : vector<8x32xf32>
    %74 = arith.mulf %69, %73 : vector<8x32xf32>
    %c2 = arith.constant 2 : index
    %c0_22 = arith.constant 0 : index
    %c0_23 = arith.constant 0 : index
    %75 = vector.load %arg6[%c2, %c0_22, %c0_23] : memref<8x8x32xf32, #tpu.memory_space<vmem>>, vector<1x8x32xf32>
    %76 = vector.shape_cast %75 : vector<1x8x32xf32> to vector<8x32xf32>
    %77 = vector.shape_cast %74 : vector<8x32xf32> to vector<1x8x32xf32>
    tpu.vector_store %arg6[%c2, %c0_22, %c0_23], %77 {strides = array<i32>} : memref<8x8x32xf32, #tpu.memory_space<vmem>>, vector<1x8x32xf32>,
    %78 = vector.extract_strided_slice %6 {offsets = [24, 0], sizes = [8, 128], strides = [1, 1]} : vector<64x128xf32> to vector<8x128xf32>
    %79 = arith.truncf %74 : vector<8x32xf32> to vector<8x32xbf16>
    %cst_24 = arith.constant dense<0.000000e+00> : vector<8x128xf32>
    %80 = tpu.matmul %79, %7, %cst_24 {dimension_numbers = #tpu.dot_dimension_numbers<[1], [0], [0], [1], [0, 0, 1, 1], [], []>} : vector<8x32xbf16>, vector<32x128xbf16>, vector<8x128xf32> -> vector<8x128xf32>
    %81 = arith.addf %78, %80 : vector<8x128xf32>
    %82 = arith.negf %81 : vector<8x128xf32>
    %83 = math.exp %82 : vector<8x128xf32>
    %cst_25 = arith.constant 1.000000e+00 : f32
    %84 = vector.broadcast %cst_25 : f32 to vector<8x128xf32>
    %85 = arith.addf %84, %83 : vector<8x128xf32>
    %86 = arith.divf %84, %85 : vector<8x128xf32>
    %87 = vector.extract_strided_slice %81 {offsets = [0, 96], sizes = [8, 32], strides = [1, 1]} : vector<8x128xf32> to vector<8x32xf32>
    %88 = math.tanh %87 : vector<8x32xf32>
    %89 = vector.extract_strided_slice %86 {offsets = [0, 0], sizes = [8, 32], strides = [1, 1]} : vector<8x128xf32> to vector<8x32xf32>
    %90 = vector.extract_strided_slice %86 {offsets = [0, 32], sizes = [8, 32], strides = [1, 1]} : vector<8x128xf32> to vector<8x32xf32>
    %91 = vector.extract_strided_slice %86 {offsets = [0, 64], sizes = [8, 32], strides = [1, 1]} : vector<8x128xf32> to vector<8x32xf32>
    %92 = arith.mulf %89, %72 : vector<8x32xf32>
    %93 = arith.mulf %90, %88 : vector<8x32xf32>
    %94 = arith.addf %92, %93 : vector<8x32xf32>
    %95 = math.tanh %94 : vector<8x32xf32>
    %96 = arith.mulf %91, %95 : vector<8x32xf32>
    %c3 = arith.constant 3 : index
    %c0_26 = arith.constant 0 : index
    %c0_27 = arith.constant 0 : index
    %97 = vector.load %arg6[%c3, %c0_26, %c0_27] : memref<8x8x32xf32, #tpu.memory_space<vmem>>, vector<1x8x32xf32>
    %98 = vector.shape_cast %97 : vector<1x8x32xf32> to vector<8x32xf32>
    %99 = vector.shape_cast %96 : vector<8x32xf32> to vector<1x8x32xf32>
    tpu.vector_store %arg6[%c3, %c0_26, %c0_27], %99 {strides = array<i32>} : memref<8x8x32xf32, #tpu.memory_space<vmem>>, vector<1x8x32xf32>,
    %100 = vector.extract_strided_slice %6 {offsets = [32, 0], sizes = [8, 128], strides = [1, 1]} : vector<64x128xf32> to vector<8x128xf32>
    %101 = arith.truncf %96 : vector<8x32xf32> to vector<8x32xbf16>
    %cst_28 = arith.constant dense<0.000000e+00> : vector<8x128xf32>
    %102 = tpu.matmul %101, %7, %cst_28 {dimension_numbers = #tpu.dot_dimension_numbers<[1], [0], [0], [1], [0, 0, 1, 1], [], []>} : vector<8x32xbf16>, vector<32x128xbf16>, vector<8x128xf32> -> vector<8x128xf32>
    %103 = arith.addf %100, %102 : vector<8x128xf32>
    %104 = arith.negf %103 : vector<8x128xf32>
    %105 = math.exp %104 : vector<8x128xf32>
    %cst_29 = arith.constant 1.000000e+00 : f32
    %106 = vector.broadcast %cst_29 : f32 to vector<8x128xf32>
    %107 = arith.addf %106, %105 : vector<8x128xf32>
    %108 = arith.divf %106, %107 : vector<8x128xf32>
    %109 = vector.extract_strided_slice %103 {offsets = [0, 96], sizes = [8, 32], strides = [1, 1]} : vector<8x128xf32> to vector<8x32xf32>
    %110 = math.tanh %109 : vector<8x32xf32>
    %111 = vector.extract_strided_slice %108 {offsets = [0, 0], sizes = [8, 32], strides = [1, 1]} : vector<8x128xf32> to vector<8x32xf32>
    %112 = vector.extract_strided_slice %108 {offsets = [0, 32], sizes = [8, 32], strides = [1, 1]} : vector<8x128xf32> to vector<8x32xf32>
    %113 = vector.extract_strided_slice %108 {offsets = [0, 64], sizes = [8, 32], strides = [1, 1]} : vector<8x128xf32> to vector<8x32xf32>
    %114 = arith.mulf %111, %94 : vector<8x32xf32>
    %115 = arith.mulf %112, %110 : vector<8x32xf32>
    %116 = arith.addf %114, %115 : vector<8x32xf32>
    %117 = math.tanh %116 : vector<8x32xf32>
    %118 = arith.mulf %113, %117 : vector<8x32xf32>
    %c4 = arith.constant 4 : index
    %c0_30 = arith.constant 0 : index
    %c0_31 = arith.constant 0 : index
    %119 = vector.load %arg6[%c4, %c0_30, %c0_31] : memref<8x8x32xf32, #tpu.memory_space<vmem>>, vector<1x8x32xf32>
    %120 = vector.shape_cast %119 : vector<1x8x32xf32> to vector<8x32xf32>
    %121 = vector.shape_cast %118 : vector<8x32xf32> to vector<1x8x32xf32>
    tpu.vector_store %arg6[%c4, %c0_30, %c0_31], %121 {strides = array<i32>} : memref<8x8x32xf32, #tpu.memory_space<vmem>>, vector<1x8x32xf32>,
    %122 = vector.extract_strided_slice %6 {offsets = [40, 0], sizes = [8, 128], strides = [1, 1]} : vector<64x128xf32> to vector<8x128xf32>
    %123 = arith.truncf %118 : vector<8x32xf32> to vector<8x32xbf16>
    %cst_32 = arith.constant dense<0.000000e+00> : vector<8x128xf32>
    %124 = tpu.matmul %123, %7, %cst_32 {dimension_numbers = #tpu.dot_dimension_numbers<[1], [0], [0], [1], [0, 0, 1, 1], [], []>} : vector<8x32xbf16>, vector<32x128xbf16>, vector<8x128xf32> -> vector<8x128xf32>
    %125 = arith.addf %122, %124 : vector<8x128xf32>
    %126 = arith.negf %125 : vector<8x128xf32>
    %127 = math.exp %126 : vector<8x128xf32>
    %cst_33 = arith.constant 1.000000e+00 : f32
    %128 = vector.broadcast %cst_33 : f32 to vector<8x128xf32>
    %129 = arith.addf %128, %127 : vector<8x128xf32>
    %130 = arith.divf %128, %129 : vector<8x128xf32>
    %131 = vector.extract_strided_slice %125 {offsets = [0, 96], sizes = [8, 32], strides = [1, 1]} : vector<8x128xf32> to vector<8x32xf32>
    %132 = math.tanh %131 : vector<8x32xf32>
    %133 = vector.extract_strided_slice %130 {offsets = [0, 0], sizes = [8, 32], strides = [1, 1]} : vector<8x128xf32> to vector<8x32xf32>
    %134 = vector.extract_strided_slice %130 {offsets = [0, 32], sizes = [8, 32], strides = [1, 1]} : vector<8x128xf32> to vector<8x32xf32>
    %135 = vector.extract_strided_slice %130 {offsets = [0, 64], sizes = [8, 32], strides = [1, 1]} : vector<8x128xf32> to vector<8x32xf32>
    %136 = arith.mulf %133, %116 : vector<8x32xf32>
    %137 = arith.mulf %134, %132 : vector<8x32xf32>
    %138 = arith.addf %136, %137 : vector<8x32xf32>
    %139 = math.tanh %138 : vector<8x32xf32>
    %140 = arith.mulf %135, %139 : vector<8x32xf32>
    %c5 = arith.constant 5 : index
    %c0_34 = arith.constant 0 : index
    %c0_35 = arith.constant 0 : index
    %141 = vector.load %arg6[%c5, %c0_34, %c0_35] : memref<8x8x32xf32, #tpu.memory_space<vmem>>, vector<1x8x32xf32>
    %142 = vector.shape_cast %141 : vector<1x8x32xf32> to vector<8x32xf32>
    %143 = vector.shape_cast %140 : vector<8x32xf32> to vector<1x8x32xf32>
    tpu.vector_store %arg6[%c5, %c0_34, %c0_35], %143 {strides = array<i32>} : memref<8x8x32xf32, #tpu.memory_space<vmem>>, vector<1x8x32xf32>,
    %144 = vector.extract_strided_slice %6 {offsets = [48, 0], sizes = [8, 128], strides = [1, 1]} : vector<64x128xf32> to vector<8x128xf32>
    %145 = arith.truncf %140 : vector<8x32xf32> to vector<8x32xbf16>
    %cst_36 = arith.constant dense<0.000000e+00> : vector<8x128xf32>
    %146 = tpu.matmul %145, %7, %cst_36 {dimension_numbers = #tpu.dot_dimension_numbers<[1], [0], [0], [1], [0, 0, 1, 1], [], []>} : vector<8x32xbf16>, vector<32x128xbf16>, vector<8x128xf32> -> vector<8x128xf32>
    %147 = arith.addf %144, %146 : vector<8x128xf32>
    %148 = arith.negf %147 : vector<8x128xf32>
    %149 = math.exp %148 : vector<8x128xf32>
    %cst_37 = arith.constant 1.000000e+00 : f32
    %150 = vector.broadcast %cst_37 : f32 to vector<8x128xf32>
    %151 = arith.addf %150, %149 : vector<8x128xf32>
    %152 = arith.divf %150, %151 : vector<8x128xf32>
    %153 = vector.extract_strided_slice %147 {offsets = [0, 96], sizes = [8, 32], strides = [1, 1]} : vector<8x128xf32> to vector<8x32xf32>
    %154 = math.tanh %153 : vector<8x32xf32>
    %155 = vector.extract_strided_slice %152 {offsets = [0, 0], sizes = [8, 32], strides = [1, 1]} : vector<8x128xf32> to vector<8x32xf32>
    %156 = vector.extract_strided_slice %152 {offsets = [0, 32], sizes = [8, 32], strides = [1, 1]} : vector<8x128xf32> to vector<8x32xf32>
    %157 = vector.extract_strided_slice %152 {offsets = [0, 64], sizes = [8, 32], strides = [1, 1]} : vector<8x128xf32> to vector<8x32xf32>
    %158 = arith.mulf %155, %138 : vector<8x32xf32>
    %159 = arith.mulf %156, %154 : vector<8x32xf32>
    %160 = arith.addf %158, %159 : vector<8x32xf32>
    %161 = math.tanh %160 : vector<8x32xf32>
    %162 = arith.mulf %157, %161 : vector<8x32xf32>
    %c6 = arith.constant 6 : index
    %c0_38 = arith.constant 0 : index
    %c0_39 = arith.constant 0 : index
    %163 = vector.load %arg6[%c6, %c0_38, %c0_39] : memref<8x8x32xf32, #tpu.memory_space<vmem>>, vector<1x8x32xf32>
    %164 = vector.shape_cast %163 : vector<1x8x32xf32> to vector<8x32xf32>
    %165 = vector.shape_cast %162 : vector<8x32xf32> to vector<1x8x32xf32>
    tpu.vector_store %arg6[%c6, %c0_38, %c0_39], %165 {strides = array<i32>} : memref<8x8x32xf32, #tpu.memory_space<vmem>>, vector<1x8x32xf32>,
    %166 = vector.extract_strided_slice %6 {offsets = [56, 0], sizes = [8, 128], strides = [1, 1]} : vector<64x128xf32> to vector<8x128xf32>
    %167 = arith.truncf %162 : vector<8x32xf32> to vector<8x32xbf16>
    %cst_40 = arith.constant dense<0.000000e+00> : vector<8x128xf32>
    %168 = tpu.matmul %167, %7, %cst_40 {dimension_numbers = #tpu.dot_dimension_numbers<[1], [0], [0], [1], [0, 0, 1, 1], [], []>} : vector<8x32xbf16>, vector<32x128xbf16>, vector<8x128xf32> -> vector<8x128xf32>
    %169 = arith.addf %166, %168 : vector<8x128xf32>
    %170 = arith.negf %169 : vector<8x128xf32>
    %171 = math.exp %170 : vector<8x128xf32>
    %cst_41 = arith.constant 1.000000e+00 : f32
    %172 = vector.broadcast %cst_41 : f32 to vector<8x128xf32>
    %173 = arith.addf %172, %171 : vector<8x128xf32>
    %174 = arith.divf %172, %173 : vector<8x128xf32>
    %175 = vector.extract_strided_slice %169 {offsets = [0, 96], sizes = [8, 32], strides = [1, 1]} : vector<8x128xf32> to vector<8x32xf32>
    %176 = math.tanh %175 : vector<8x32xf32>
    %177 = vector.extract_strided_slice %174 {offsets = [0, 0], sizes = [8, 32], strides = [1, 1]} : vector<8x128xf32> to vector<8x32xf32>
    %178 = vector.extract_strided_slice %174 {offsets = [0, 32], sizes = [8, 32], strides = [1, 1]} : vector<8x128xf32> to vector<8x32xf32>
    %179 = vector.extract_strided_slice %174 {offsets = [0, 64], sizes = [8, 32], strides = [1, 1]} : vector<8x128xf32> to vector<8x32xf32>
    %180 = arith.mulf %177, %160 : vector<8x32xf32>
    %181 = arith.mulf %178, %176 : vector<8x32xf32>
    %182 = arith.addf %180, %181 : vector<8x32xf32>
    %183 = math.tanh %182 : vector<8x32xf32>
    %184 = arith.mulf %179, %183 : vector<8x32xf32>
    %c7 = arith.constant 7 : index
    %c0_42 = arith.constant 0 : index
    %c0_43 = arith.constant 0 : index
    %185 = vector.load %arg6[%c7, %c0_42, %c0_43] : memref<8x8x32xf32, #tpu.memory_space<vmem>>, vector<1x8x32xf32>
    %186 = vector.shape_cast %185 : vector<1x8x32xf32> to vector<8x32xf32>
    %187 = vector.shape_cast %184 : vector<8x32xf32> to vector<1x8x32xf32>
    tpu.vector_store %arg6[%c7, %c0_42, %c0_43], %187 {strides = array<i32>} : memref<8x8x32xf32, #tpu.memory_space<vmem>>, vector<1x8x32xf32>,
    %c0_44 = arith.constant 0 : index
    %c0_45 = arith.constant 0 : index
    %188 = vector.load %arg7[%c0_44, %c0_45] : memref<8x32xf32, #tpu.memory_space<vmem>>, vector<8x32xf32>
    tpu.vector_store %arg7[%c0_44, %c0_45], %182 {strides = array<i32>} : memref<8x32xf32, #tpu.memory_space<vmem>>, vector<8x32xf32>,
    return
  }
}

</mosaic_0001>

<bundles_post_ra>
// kernel: tpu_custom_call.1
= control target key start
LH: loop header
LB: loop body
LE: loop exit
PB: predicated region body
PF: predicated region fallthrough
CT: control target
= control target key end

     0   :  { %13 = vsyncpa [#allocation3], 0  ;;  %v1056_v1 = vmov 0.0   ;;  %vm55_vm0 = vcmask 130048   ;;  %vm1057_vm1 = vmmov 0   ;;  %s1322_s0 = inlined_call_operand.vmem [shape: f32[64,16], index: 0, kind: input, shape index: {}]   ;;  %s1323_s1 = inlined_call_operand.vmem [shape: f32[8,32], index: 1, kind: input, shape index: {}]   ;;  %s1324_s2 = inlined_call_operand.vmem [shape: bf16[16,128], index: 2, kind: input, shape index: {}]   ;;  %s1325_s3 = inlined_call_operand.vmem [shape: bf16[32,128], index: 3, kind: input, shape index: {}]   ;;  %s1326_s4 = inlined_call_operand.vmem [shape: f32[1,128], index: 4, kind: input, shape index: {}]   ;;  %s1327_s5 = inlined_call_operand.vmem [shape: f32[1,32], index: 5, kind: input, shape index: {}]   ;;  %s1328_s6 = inlined_call_operand.hbm [shape: f32[8,8,32], index: 6, kind: output, shape index: {0}]   ;;  %s1329_s7 = inlined_call_operand.hbm [shape: f32[8,32], index: 7, kind: output, shape index: {1}]  }
   0x1   :  { %v945_v0 = vld [vmem:[%s1324_s2] sm:$0xff]   ;;  %873 = vmatprep.subr.bf16.mxu1 %v1056_v1  ;;  %v1111_v2 = vld [vmem:[%s1325_s3 + $0x8] sm:$0xff]   ;;  %v30_v5 = vld [vmem:[%s1322_s0 + $0x10] sm:$0xff]  ;;  %877 = vmatprep.mubr.msk.bf16.mxu1 %vm1057_vm1, %v1056_v1 }
   0x2   :  { %863 = vmatprep.subr.bf16.mxu0 %v945_v0  ;;  %v28_v3 = vld [vmem:[%s1322_s0] sm:$0xff]  ;;  %v29_v4 = vld [vmem:[%s1322_s0 + $0x8] sm:$0xff]  ;;  %874 = vmatpush3.bf16.msra.mxu1 %v1111_v2  ;;  %v31_v7 = vld [vmem:[%s1322_s0 + $0x18] sm:$0xff] }
   0x3   :  { %864 = vmatpush3.bf16.msra.mxu0 %v945_v0  ;;  %v36_v6 = vpack.c.bf16 %v29_v4, %v28_v3  ;;  %875 = vmatprep.subr.bf16.mxu1 %v1056_v1  ;;  %v37_v8 = vpack.c.bf16 %v31_v7, %v30_v5  ;;  %v1130_v9 = vld [vmem:[%s1325_s3] sm:$0xff]  }
   0x4   :  { %v137_v10 = vld [vmem:[%s1323_s1] sm:$0xff] }
   0x5   :  { %14 = vsyncpa [#allocation5], 0  ;;  %865 = vmatprep.mubr.msk.bf16.mxu0 %vm55_vm0, %v36_v6  ;;  %889 = vmatprep.subr.bf16.mxu0 %v1056_v1  ;;  %v145_v11 = vpack.c.bf16 %v137_v10, %v137_v10  ;;  %vm158_vm2 = vcmask 261120   ;;  %v1158_v13 = vld [vmem:[%s1326_s4] ss:$0 sm:$0xff]  ;;  %s1058_s16 = smov 64  }
   0x6   :  { %866 = vmatmul.mubr.msk.bf16.vlgmr.msra.gmra.mxu0 %vm55_vm0, %v37_v8  ;;  %876 = vmatpush3.bf16.msra.mxu1 %v1130_v9  ;;  %s1059_s4 = smov 96   ;;  %v815_v28 = vld [vmem:[%s1327_s5] ss:$0 sm:$0xff]  ;;  %v33_v56 = vld [vmem:[%s1322_s0 + $0x28] sm:$0xff]  ;;  %v34_v57 = vld [vmem:[%s1322_s0 + $0x30] sm:$0xff] }
   0x7   :  { %890 = vmatpush3.bf16.msra.mxu0 %v1111_v2  ;;  %881 = vmatprep.subr.bf16.mxu1 %v1056_v1  ;;  %v32_v55 = vld [vmem:[%s1322_s0 + $0x20] sm:$0xff]  ;;  %v35_v59 = vld [vmem:[%s1322_s0 + $0x38] sm:$0xff]  ;;  %s1060_s0 = smov [#allocation4]  }
   0x8   :  { %891 = vmatprep.subr.bf16.mxu0 %v1056_v1  ;;  %v38_v58 = vpack.c.bf16 %v33_v56, %v32_v55  ;;  %v39_v60 = vpack.c.bf16 %v35_v59, %v34_v57  ;;  %s797_s26 = sshll.u32 %s1060_s0, 4  ;;  %s798_s26 = int_to_ptr.vmem [resolvable:$true] %s797_s26 }
   0x9   :  { %878 = vmatmul.mubr.msk.bf16.vlgmr.msra.gmra.mxu1 %vm158_vm2, %v145_v11  ;;  %s1012_s27 = scalar_lea.vmem %s798_s26, 128  ;;  %p1017_p1 = scmp.lt.s32.totalorder %s798_s26, %s798_s26 }
   0xa   :  { %882 = vmatpush3.bf16.msra.mxu1 %v1111_v2  ;;  %885 = vmatprep.mubr.msk.bf16.mxu1 %vm1057_vm1, %v1056_v1  ;;  %p1013_p0 = scmp.ne.s32.totalorder %s798_s26, %s1012_s27  ;;  %p1018_p2 = scmp.lt.s32.totalorder %s1012_s27, %s1012_s27 }
   0xb   :  { %883 = vmatprep.subr.bf16.mxu1 %v1056_v1  ;;  %892 = vmatpush3.bf16.msra.mxu0 %v1130_v9 }
   0xc   :  { %905 = vmatprep.subr.bf16.mxu0 %v1056_v1  ;;  %869 = vmatprep.mubr.msk.bf16.mxu0 %vm55_vm0, %v38_v58  ;;  %p1019_p3 = por %p1018_p2, %p1017_p1 }
   0xe   :  { %884 = vmatpush3.bf16.msra.mxu1 %v1130_v9  ;;  %870 = vmatmul.mubr.msk.bf16.gmra.mxu0 %vm55_vm0, %v39_v60  ;;  %p1020_p4 = pnand %p1019_p3, %p1013_p0 }
   0xf   :  { %897 = vmatprep.subr.bf16.mxu1 %v1056_v1  ;;  %893 = vmatprep.mubr.msk.bf16.mxu0 %vm1057_vm1, %v1056_v1 }
  0xc6   :  { %v1153_v12 = vpop.f32.mrf.mxu0 }
  0xc7   :  { %v111_v8 = vadd.f32 %v1153_v12, %v1158_v13 }
  0xc8   :  { %v102_v14 = vpop.f32.mrf.mxu0 }
  0xc9   :  { %v103_v15 = vadd.f32 %v1158_v13, %v102_v14  ;;  %v196_v16 = vpop.f32.mrf.mxu1 }
  0xca   :  { %v1179_v37 = vpop.f32.mrf.mxu0 }
  0xcb   :  { %v202_v17 = vadd.f32 %v196_v16, %v103_v15  ;;  %v879_v18 = vpop.f32.mrf.mxu1 }
  0xcc   :  { %v105_v38 = vpop.f32.mrf.mxu0 }
  0xcd   :  { %948 = vtanh.f32 %v202_v17  ;;  %v199_v19 = vpop.f32.mrf.mxu1  ;;  %v819_v22 = vmul.f32 -1.442695, %v202_v17  ;;  %v106_v39 = vadd.f32 %v1158_v13, %v105_v38 }
  0xce   :  { %v1213_v4 = vpop.f32.mrf.mxu0 }
  0xcf   :  { %v880_v20 = vpop.f32.mrf.mxu1  ;;  %950 = vpow2.f32 %v819_v22 }
  0xd0   :  { %v1215_v5 = vpop.f32.mrf.mxu0 }
  0xd2   :  { %v1217_v6 = vpop.f32.mrf.mxu0 }
  0xd4   :  { %v1219_v7 = vpop.f32.mrf.mxu0 }
  0xda   :  { %v949_v21 = vpop.eup %948 }
  0xdb   :  { %212 = vrot.lane.b32.xlu0 %v949_v21, %s1058_s16 }
  0xdc   :  { %v951_v23 = vpop.eup %950 }
  0xdd   :  { %v206_v24 = vadd.f32 1.0, %v951_v23 }
  0xdf   :  { %952 = vrcp.f32 %v206_v24 }
  0xec   :  { %v953_v25 = vpop.eup %952 }
  0xed   :  { %v210_v29 = vmul.f32 %v953_v25, %v815_v28 }
 0x14d   :  { %v213_v26 = vpop.permute.xlu0 %212 }
 0x14e   :  { %v215_v27 = vmul.f32 %v953_v25, %v213_v26 }
 0x150   :  { %217 = vrot.lane.b32.xlu0 %v215_v27, %s1059_s4 }
 0x1c2   :  { %v218_v30 = vpop.permute.xlu0 %217 }
 0x1c3   :  { %v220_v31 = vadd.f32 %v218_v30, %v210_v29 }
 0x1c5   :  { %954 = vtanh.f32 %v220_v31 }
 0x1d2   :  { %v955_v32 = vpop.eup %954 }
 0x1d3   :  { %223 = vrot.lane.b32.xlu1 %v955_v32, %s1058_s16 }
 0x245   :  { %v224_v33 = vpop.permute.xlu1 %223 }
 0x246   :  { %v1167_v34 = vmul.f32 %v953_v25, %v224_v33 }
 0x248   :  { %v232_v35 = vpack.c.bf16 %v1167_v34, %v1167_v34 }
 0x24a   :  { %234 = vrot.lane.b32.xlu1 %v232_v35, %s1058_s16 }
 0x2bc   :  { %v235_v36 = vpop.permute.xlu1 %234 }
 0x2bd   :  { %886 = vmatmul.mubr.msk.bf16.vlgmr.msra.gmra.mxu1 %vm158_vm2, %v235_v36 }
 0x2be   :  { %898 = vmatpush3.bf16.msra.mxu1 %v1111_v2  ;;  %901 = vmatprep.mubr.msk.bf16.mxu1 %vm1057_vm1, %v1056_v1 }
 0x2bf   :  { %899 = vmatprep.subr.bf16.mxu1 %v1056_v1 }
 0x2c2   :  { %900 = vmatpush3.bf16.msra.mxu1 %v1130_v9 }
 0x2c3   :  { %913 = vmatprep.subr.bf16.mxu1 %v1056_v1 }
 0x37d   :  { %v273_v40 = vpop.f32.mrf.mxu1 }
 0x37e   :  { %v279_v41 = vadd.f32 %v273_v40, %v106_v39 }
 0x37f   :  { %v887_v42 = vpop.f32.mrf.mxu1 }
 0x380   :  { %956 = vtanh.f32 %v279_v41  ;;  %v821_v46 = vmul.f32 -1.442695, %v279_v41 }
 0x381   :  { %v276_v43 = vpop.f32.mrf.mxu1 }
 0x382   :  { %958 = vpow2.f32 %v821_v46 }
 0x383   :  { %v888_v44 = vpop.f32.mrf.mxu1 }
 0x38d   :  { %v957_v45 = vpop.eup %956 }
 0x38e   :  { %289 = vrot.lane.b32.xlu0 %v957_v45, %s1058_s16 }
 0x38f   :  { %v959_v47 = vpop.eup %958 }
 0x390   :  { %v283_v48 = vadd.f32 1.0, %v959_v47 }
 0x392   :  { %960 = vrcp.f32 %v283_v48 }
 0x39f   :  { %v961_v49 = vpop.eup %960 }
 0x3a0   :  { %v287_v52 = vmul.f32 %v961_v49, %v220_v31  ;;  %v114_v31 = vadd.f32 %v1179_v37, %v1158_v13 }
 0x400   :  { %v290_v50 = vpop.permute.xlu0 %289 }
 0x401   :  { %v292_v51 = vmul.f32 %v961_v49, %v290_v50 }
 0x403   :  { %294 = vrot.lane.b32.xlu1 %v292_v51, %s1059_s4 }
 0x475   :  { %v295_v53 = vpop.permute.xlu1 %294 }
 0x476   :  { %v297_v54 = vadd.f32 %v295_v53, %v287_v52  ;;  %v119_v53 = vadd.f32 %v1158_v13, %v1215_v5 }
 0x478   :  { %962 = vtanh.f32 %v297_v54 }
 0x485   :  { %v963_v61 = vpop.eup %962 }
 0x486   :  { %300 = vrot.lane.b32.xlu0 %v963_v61, %s1058_s16 }
 0x4f8   :  { %v301_v62 = vpop.permute.xlu0 %300 }
 0x4f9   :  { %v1201_v63 = vmul.f32 %v961_v49, %v301_v62 }
 0x4fb   :  { %v310_v0 = vpack.c.bf16 %v1201_v63, %v1201_v63 }
 0x4fd   :  { %312 = vrot.lane.b32.xlu1 %v310_v0, %s1058_s16 }
 0x56f   :  { %v313_v3 = vpop.permute.xlu1 %312 }
 0x570   :  { %894 = vmatmul.mubr.msk.bf16.vlgmr.msra.gmra.mxu0 %vm158_vm2, %v313_v3 }
 0x571   :  { %906 = vmatpush3.bf16.msra.mxu0 %v1111_v2  ;;  %909 = vmatprep.mubr.msk.bf16.mxu0 %vm1057_vm1, %v1056_v1 }
 0x572   :  { %907 = vmatprep.subr.bf16.mxu0 %v1056_v1 }
 0x575   :  { %908 = vmatpush3.bf16.msra.mxu0 %v1130_v9 }
 0x576   :  { %921 = vmatprep.subr.bf16.mxu0 %v1056_v1 }
 0x630   :  { %v351_v10 = vpop.f32.mrf.mxu0 }
 0x631   :  { %v357_v11 = vadd.f32 %v351_v10, %v111_v8 }
 0x632   :  { %v895_v14 = vpop.f32.mrf.mxu0 }
 0x633   :  { %964 = vtanh.f32 %v357_v11  ;;  %v823_v18 = vmul.f32 -1.442695, %v357_v11 }
 0x634   :  { %v354_v15 = vpop.f32.mrf.mxu0 }
 0x635   :  { %966 = vpow2.f32 %v823_v18 }
 0x636   :  { %v896_v16 = vpop.f32.mrf.mxu0 }
 0x640   :  { %v965_v17 = vpop.eup %964 }
 0x641   :  { %367 = vrot.lane.b32.xlu0 %v965_v17, %s1058_s16 }
 0x642   :  { %v967_v19 = vpop.eup %966 }
 0x643   :  { %v361_v20 = vadd.f32 1.0, %v967_v19  ;;  %v122_v19 = vadd.f32 %v1158_v13, %v1219_v7 }
 0x645   :  { %968 = vrcp.f32 %v361_v20 }
 0x652   :  { %v969_v21 = vpop.eup %968 }
 0x653   :  { %v365_v12 = vmul.f32 %v969_v21, %v297_v54 }
 0x6b3   :  { %v368_v22 = vpop.permute.xlu0 %367 }
 0x6b4   :  { %v370_v23 = vmul.f32 %v969_v21, %v368_v22 }
 0x6b6   :  { %372 = vrot.lane.b32.xlu1 %v370_v23, %s1059_s4 }
 0x728   :  { %v373_v24 = vpop.permute.xlu1 %372 }
 0x729   :  { %v375_v25 = vadd.f32 %v373_v24, %v365_v12 }
 0x72b   :  { %970 = vtanh.f32 %v375_v25 }
 0x738   :  { %v971_v26 = vpop.eup %970 }
 0x739   :  { %378 = vrot.lane.b32.xlu0 %v971_v26, %s1058_s16 }
 0x7ab   :  { %v379_v27 = vpop.permute.xlu0 %378 }
 0x7ac   :  { %v1226_v28 = vmul.f32 %v969_v21, %v379_v27 }
 0x7ae   :  { %v388_v29 = vpack.c.bf16 %v1226_v28, %v1226_v28 }
 0x7b0   :  { %390 = vrot.lane.b32.xlu1 %v388_v29, %s1058_s16 }
 0x822   :  { %v391_v30 = vpop.permute.xlu1 %390 }
 0x823   :  { %902 = vmatmul.mubr.msk.bf16.vlgmr.msra.gmra.mxu1 %vm158_vm2, %v391_v30 }
 0x824   :  { %914 = vmatpush3.bf16.msra.mxu1 %v1111_v2  ;;  %917 = vmatprep.mubr.msk.bf16.mxu1 %vm1057_vm1, %v1056_v1 }
 0x825   :  { %915 = vmatprep.subr.bf16.mxu1 %v1056_v1 }
 0x828   :  { %916 = vmatpush3.bf16.msra.mxu1 %v1130_v9 }
 0x829   :  { %929 = vmatprep.subr.bf16.mxu1 %v1056_v1 }
 0x8e3   :  { %v429_v32 = vpop.f32.mrf.mxu1 }
 0x8e4   :  { %v435_v33 = vadd.f32 %v429_v32, %v114_v31 }
 0x8e5   :  { %v903_v35 = vpop.f32.mrf.mxu1 }
 0x8e6   :  { %972 = vtanh.f32 %v435_v33  ;;  %v825_v40 = vmul.f32 -1.442695, %v435_v33 }
 0x8e7   :  { %v432_v36 = vpop.f32.mrf.mxu1 }
 0x8e8   :  { %974 = vpow2.f32 %v825_v40 }
 0x8e9   :  { %v904_v38 = vpop.f32.mrf.mxu1 }
 0x8ea   :  { %v127_v38 = vadd.f32 %v1213_v4, %v1158_v13 }
 0x8f3   :  { %v973_v39 = vpop.eup %972 }
 0x8f4   :  { %445 = vrot.lane.b32.xlu0 %v973_v39, %s1058_s16 }
 0x8f5   :  { %v975_v41 = vpop.eup %974 }
 0x8f6   :  { %v439_v42 = vadd.f32 1.0, %v975_v41 }
 0x8f8   :  { %976 = vrcp.f32 %v439_v42 }
 0x905   :  { %v977_v43 = vpop.eup %976 }
 0x906   :  { %v443_v37 = vmul.f32 %v977_v43, %v375_v25 }
 0x966   :  { %v446_v44 = vpop.permute.xlu0 %445 }
 0x967   :  { %v448_v45 = vmul.f32 %v977_v43, %v446_v44 }
 0x969   :  { %450 = vrot.lane.b32.xlu1 %v448_v45, %s1059_s4 }
 0x9db   :  { %v451_v46 = vpop.permute.xlu1 %450 }
 0x9dc   :  { %v453_v47 = vadd.f32 %v451_v46, %v443_v37 }
 0x9de   :  { %978 = vtanh.f32 %v453_v47 }
 0x9eb   :  { %v979_v48 = vpop.eup %978 }
 0x9ec   :  { %456 = vrot.lane.b32.xlu0 %v979_v48, %s1058_s16 }
 0xa5e   :  { %v457_v49 = vpop.permute.xlu0 %456 }
 0xa5f   :  { %v1243_v50 = vmul.f32 %v977_v43, %v457_v49 }
 0xa61   :  { %v466_v51 = vpack.c.bf16 %v1243_v50, %v1243_v50 }
 0xa63   :  { %468 = vrot.lane.b32.xlu1 %v466_v51, %s1058_s16 }
 0xad5   :  { %v469_v52 = vpop.permute.xlu1 %468 }
 0xad6   :  { %910 = vmatmul.mubr.msk.bf16.vlgmr.msra.gmra.mxu0 %vm158_vm2, %v469_v52 }
 0xad7   :  { %922 = vmatpush3.bf16.msra.mxu0 %v1111_v2  ;;  %925 = vmatprep.mubr.msk.bf16.mxu0 %vm1057_vm1, %v1056_v1 }
 0xad8   :  { %923 = vmatprep.subr.bf16.mxu0 %v1056_v1 }
 0xadb   :  { %924 = vmatpush3.bf16.msra.mxu0 %v1130_v9 }
 0xb96   :  { %v507_v54 = vpop.f32.mrf.mxu0 }
 0xb97   :  { %v513_v55 = vadd.f32 %v507_v54, %v119_v53 }
 0xb98   :  { %v911_v56 = vpop.f32.mrf.mxu0 }
 0xb99   :  { %980 = vtanh.f32 %v513_v55  ;;  %v827_v60 = vmul.f32 -1.442695, %v513_v55 }
 0xb9a   :  { %v510_v57 = vpop.f32.mrf.mxu0 }
 0xb9b   :  { %982 = vpow2.f32 %v827_v60 }
 0xb9c   :  { %v912_v58 = vpop.f32.mrf.mxu0 }
 0xb9d   :  { %v130_v58 = vadd.f32 %v1217_v6, %v1158_v13 }
 0xba6   :  { %v981_v59 = vpop.eup %980 }
 0xba7   :  { %523 = vrot.lane.b32.xlu0 %v981_v59, %s1058_s16 }
 0xba8   :  { %v983_v61 = vpop.eup %982 }
 0xba9   :  { %v517_v62 = vadd.f32 1.0, %v983_v61 }
 0xbab   :  { %984 = vrcp.f32 %v517_v62 }
 0xbb8   :  { %v985_v0 = vpop.eup %984 }
 0xbb9   :  { %v521_v5 = vmul.f32 %v985_v0, %v453_v47 }
 0xc19   :  { %v524_v3 = vpop.permute.xlu0 %523 }
 0xc1a   :  { %v526_v8 = vmul.f32 %v985_v0, %v524_v3 }
 0xc1c   :  { %528 = vrot.lane.b32.xlu1 %v526_v8, %s1059_s4 }
 0xc8e   :  { %v529_v10 = vpop.permute.xlu1 %528 }
 0xc8f   :  { %v531_v11 = vadd.f32 %v529_v10, %v521_v5 }
 0xc91   :  { %986 = vtanh.f32 %v531_v11 }
 0xc9e   :  { %v987_v14 = vpop.eup %986 }
 0xc9f   :  { %534 = vrot.lane.b32.xlu0 %v987_v14, %s1058_s16 }
 0xd11   :  { %v535_v15 = vpop.permute.xlu0 %534 }
 0xd12   :  { %v1259_v16 = vmul.f32 %v985_v0, %v535_v15 }
 0xd14   :  { %v544_v17 = vpack.c.bf16 %v1259_v16, %v1259_v16 }
 0xd16   :  { %546 = vrot.lane.b32.xlu1 %v544_v17, %s1058_s16 }
 0xd88   :  { %v547_v18 = vpop.permute.xlu1 %546 }
 0xd89   :  { %918 = vmatmul.mubr.msk.bf16.vlgmr.msra.gmra.mxu1 %vm158_vm2, %v547_v18 }
 0xd8a   :  { %930 = vmatpush3.bf16.msra.mxu1 %v1111_v2  ;;  %933 = vmatprep.mubr.msk.bf16.mxu1 %vm1057_vm1, %v1056_v1 }
 0xd8b   :  { %931 = vmatprep.subr.bf16.mxu1 %v1056_v1 }
 0xd8e   :  { %932 = vmatpush3.bf16.msra.mxu1 %v1130_v9 }
 0xe49   :  { %v585_v20 = vpop.f32.mrf.mxu1 }
 0xe4a   :  { %v591_v21 = vadd.f32 %v585_v20, %v122_v19 }
 0xe4b   :  { %v919_v22 = vpop.f32.mrf.mxu1 }
 0xe4c   :  { %988 = vtanh.f32 %v591_v21  ;;  %v829_v2 = vmul.f32 -1.442695, %v591_v21 }
 0xe4d   :  { %v588_v23 = vpop.f32.mrf.mxu1 }
 0xe4e   :  { %990 = vpow2.f32 %v829_v2 }
 0xe4f   :  { %v920_v12 = vpop.f32.mrf.mxu1 }
 0xe59   :  { %v989_v24 = vpop.eup %988 }
 0xe5a   :  { %601 = vrot.lane.b32.xlu0 %v989_v24, %s1058_s16 }
 0xe5b   :  { %v991_v25 = vpop.eup %990 }
 0xe5c   :  { %v595_v26 = vadd.f32 1.0, %v991_v25 }
 0xe5e   :  { %992 = vrcp.f32 %v595_v26 }
 0xe6b   :  { %v993_v1 = vpop.eup %992 }
 0xe6c   :  { %v599_v7 = vmul.f32 %v993_v1, %v531_v11 }
 0xecc   :  { %v602_v27 = vpop.permute.xlu0 %601 }
 0xecd   :  { %v604_v9 = vmul.f32 %v993_v1, %v602_v27 }
 0xecf   :  { %606 = vrot.lane.b32.xlu1 %v604_v9, %s1059_s4 }
 0xf41   :  { %v607_v29 = vpop.permute.xlu1 %606 }
 0xf42   :  { %v609_v30 = vadd.f32 %v607_v29, %v599_v7 }
 0xf44   :  { %994 = vtanh.f32 %v609_v30 }
 0xf51   :  { %v995_v31 = vpop.eup %994 }
 0xf52   :  { %612 = vrot.lane.b32.xlu0 %v995_v31, %s1058_s16 }
 0xfc4   :  { %v613_v32 = vpop.permute.xlu0 %612 }
 0xfc5   :  { %v1275_v33 = vmul.f32 %v993_v1, %v613_v32 }
 0xfc7   :  { %v622_v35 = vpack.c.bf16 %v1275_v33, %v1275_v33 }
 0xfc9   :  { %624 = vrot.lane.b32.xlu1 %v622_v35, %s1058_s16 }
0x103b   :  { %v625_v36 = vpop.permute.xlu1 %624 }
0x103c   :  { %926 = vmatmul.mubr.msk.bf16.vlgmr.msra.gmra.mxu0 %vm158_vm2, %v625_v36 }
0x10fc   :  { %v663_v39 = vpop.f32.mrf.mxu0 }
0x10fd   :  { %v669_v40 = vadd.f32 %v663_v39, %v127_v38 }
0x10fe   :  { %v927_v41 = vpop.f32.mrf.mxu0 }
0x10ff   :  { %996 = vtanh.f32 %v669_v40  ;;  %v831_v45 = vmul.f32 -1.442695, %v669_v40 }
0x1100   :  { %v666_v42 = vpop.f32.mrf.mxu0 }
0x1101   :  { %998 = vpow2.f32 %v831_v45 }
0x1102   :  { %v928_v43 = vpop.f32.mrf.mxu0 }
0x110c   :  { %v997_v44 = vpop.eup %996 }
0x110d   :  { %679 = vrot.lane.b32.xlu0 %v997_v44, %s1058_s16 }
0x110e   :  { %v999_v37 = vpop.eup %998 }
0x110f   :  { %v673_v46 = vadd.f32 1.0, %v999_v37 }
0x1111   :  { %1000 = vrcp.f32 %v673_v46 }
0x111e   :  { %v1001_v47 = vpop.eup %1000 }
0x111f   :  { %v677_v4 = vmul.f32 %v1001_v47, %v609_v30 }
0x117f   :  { %v680_v48 = vpop.permute.xlu0 %679 }
0x1180   :  { %v682_v49 = vmul.f32 %v1001_v47, %v680_v48 }
0x1182   :  { %684 = vrot.lane.b32.xlu1 %v682_v49, %s1059_s4 }
0x11f4   :  { %v685_v51 = vpop.permute.xlu1 %684 }
0x11f5   :  { %v687_v52 = vadd.f32 %v685_v51, %v677_v4 }
0x11f7   :  { %1002 = vtanh.f32 %v687_v52 }
0x1204   :  { %v1003_v53 = vpop.eup %1002 }
0x1205   :  { %690 = vrot.lane.b32.xlu0 %v1003_v53, %s1058_s16 }
0x1277   :  { %v691_v54 = vpop.permute.xlu0 %690 }
0x1278   :  { %v693_v55 = vmul.f32 %v1001_v47, %v691_v54 }
0x127a   :  { %v700_v56 = vpack.c.bf16 %v693_v55, %v693_v55 }
0x127c   :  { %702 = vrot.lane.b32.xlu1 %v700_v56, %s1058_s16 }
0x12ee   :  { %v703_v57 = vpop.permute.xlu1 %702 }
0x12ef   :  { %934 = vmatmul.mubr.msk.bf16.vlgmr.msra.gmra.mxu1 %vm158_vm2, %v703_v57 }
0x13af   :  { %v741_v59 = vpop.f32.mrf.mxu1 }
0x13b0   :  { %v747_v60 = vadd.f32 %v741_v59, %v130_v58 }
0x13b1   :  { %v935_v61 = vpop.f32.mrf.mxu1 }
0x13b2   :  { %1004 = vtanh.f32 %v747_v60  ;;  %v833_v8 = vmul.f32 -1.442695, %v747_v60 }
0x13b3   :  { %v744_v62 = vpop.f32.mrf.mxu1 }
0x13b4   :  { %1006 = vpow2.f32 %v833_v8 }
0x13b5   :  { %v936_v0 = vpop.f32.mrf.mxu1 }
0x13bf   :  { %v1005_v3 = vpop.eup %1004 }
0x13c0   :  { %757 = vrot.lane.b32.xlu0 %v1005_v3, %s1058_s16 }
0x13c1   :  { %v1007_v5 = vpop.eup %1006 }
0x13c2   :  { %v751_v10 = vadd.f32 1.0, %v1007_v5 }
0x13c4   :  { %1008 = vrcp.f32 %v751_v10 }
0x13d1   :  { %v1009_v11 = vpop.eup %1008 }
0x13d2   :  { %v755_v13 = vmul.f32 %v1009_v11, %v687_v52 }
0x1432   :  { %v758_v14 = vpop.permute.xlu0 %757 }
0x1433   :  { %v760_v15 = vmul.f32 %v1009_v11, %v758_v14 }
0x1435   :  { %762 = vrot.lane.b32.xlu1 %v760_v15, %s1059_s4 }
0x1439   :  { %228 = vrot.lane.b32.xlu1 %v1167_v34, %s1058_s16 }
0x143d   :  { %383 = vrot.lane.b32.xlu1 %v1226_v28, %s1058_s16 }
0x1441   :  { %539 = vrot.lane.b32.xlu1 %v1259_v16, %s1058_s16 }
0x1445   :  { %695 = vrot.lane.b32.xlu1 %v693_v55, %s1058_s16 }
0x14a7   :  { %v763_v6 = vpop.permute.xlu1 %762 }
0x14a8   :  { %v765_v17 = vadd.f32 %v763_v6, %v755_v13 }
0x14aa   :  { %1010 = vtanh.f32 %v765_v17  ;;  %778 = vst.msk [vmem:[#allocation4] sm:$0xff] %vm158_vm2, %v765_v17 }
0x14ab   :  { %v229_v18 = vpop.permute.xlu1 %228 }
0x14ac   :  { %231 = vst.msk [vmem:[#allocation2] sm:$0xff] %vm158_vm2, %v229_v18 }
0x14af   :  { %v384_v19 = vpop.permute.xlu1 %383 }
0x14b0   :  { %387 = vst.msk [vmem:[#allocation2 + $0x10] sm:$0xff] %vm158_vm2, %v384_v19 }
0x14b3   :  { %v540_v34 = vpop.permute.xlu1 %539 }
0x14b4   :  { %543 = vst.msk [vmem:[#allocation2 + $0x20] sm:$0xff] %vm158_vm2, %v540_v34 }
0x14b7   :  { %v1011_v28 = vpop.eup %1010  ;;  %v696_v20 = vpop.permute.xlu1 %695 }
0x14b8   :  { %699 = vst.msk [vmem:[#allocation2 + $0x30] sm:$0xff] %vm158_vm2, %v696_v20  ;;  %768 = vrot.lane.b32.xlu0 %v1011_v28, %s1058_s16 }
0x14bc   :  { %305 = vrot.lane.b32.xlu0 %v1201_v63, %s1058_s16 }
0x14c0   :  { %461 = vrot.lane.b32.xlu0 %v1243_v50, %s1058_s16 }
0x14c4   :  { %617 = vrot.lane.b32.xlu0 %v1275_v33, %s1058_s16 }
0x14c5   :  { %1023 = shalt.err (!%p1020_p4)
}
0x14c6   :  { %800 = dma.vmem_to_hbm [thread:$0]  %s798_s26, 128, %s1329_s7, [#allocation5]  }
0x14c7   :  { %s1061_s30 = smov [#allocation2]  }
0x14c8   :  { %s784_s8 = sshll.u32 %s1061_s30, 4  ;;  %s785_s8 = int_to_ptr.vmem [resolvable:$true] %s784_s8 }
0x14c9   :  { %s1032_s7 = scalar_lea.vmem %s785_s8, 1024  ;;  %p1037_p6 = scmp.lt.s32.totalorder %s785_s8, %s785_s8 }
0x14ca   :  { %p1033_p5 = scmp.ne.s32.totalorder %s785_s8, %s1032_s7  ;;  %p1038_p7 = scmp.lt.s32.totalorder %s1032_s7, %s1032_s7 }
0x14cc   :  { %p1039_p8 = por %p1038_p7, %p1037_p6 }
0x14ce   :  { %p1040_p9 = pnand %p1039_p8, %p1033_p5 }
0x152a   :  { %v769_v63 = vpop.permute.xlu0 %768 }
0x152b   :  { %v771_v16 = vmul.f32 %v1009_v11, %v769_v63 }
0x152d   :  { %773 = vrot.lane.b32.xlu0 %v771_v16, %s1058_s16 }
0x152e   :  { %v306_v50 = vpop.permute.xlu0 %305 }
0x152f   :  { %309 = vst.msk [vmem:[#allocation2 + $0x8] sm:$0xff] %vm158_vm2, %v306_v50 }
0x1532   :  { %v462_v21 = vpop.permute.xlu0 %461 }
0x1533   :  { %465 = vst.msk [vmem:[#allocation2 + $0x18] sm:$0xff] %vm158_vm2, %v462_v21 }
0x1536   :  { %v618_v22 = vpop.permute.xlu0 %617 }
0x1537   :  { %621 = vst.msk [vmem:[#allocation2 + $0x28] sm:$0xff] %vm158_vm2, %v618_v22 }
0x159f   :  { %v774_v23 = vpop.permute.xlu0 %773 }
0x15a0   :  { %777 = vst.msk [vmem:[#allocation2 + $0x38] sm:$0xff] %vm158_vm2, %v774_v23 }
0x15a1   :  { %1043 = shalt.err (!%p1040_p9)
}
0x15a2   :  { %s1062_s9 = smov 128   ;;  %s1063_s2 = smov 8  }
0x15a3   :  { %790 = dma.vmem_to_hbm [thread:$0]  %s785_s8, 1024, %s1328_s6, [#allocation3], %s1062_s9, %s1062_s9, %s1063_s2  }
0x15a4   :  { %1052 = dma.done.wait [#allocation3], 1024  }
0x15a5   :  { %1053 = vsyncadd [#allocation3], 4294966272 }
0x15a6   :  { %1054 = dma.done.wait [#allocation5], 128  }
0x15a7   :  { %1055 = vsyncadd [#allocation5], 4294967168 }
0x15a8   :  { %807 = vsyncpa [#allocation3], 1 }
0x15a9   :  { %808 = vsyncpa [#allocation5], 1 }

</bundles_post_ra>
